<compile_context>
chip_gen: v7x
topology: tpu7x:2x2x1
jax: 0.10.0
libtpu: 0.0.40
codegen_flags: <defaults>
</compile_context>

<pallas_src>
import jax
import jax.numpy as jnp
import numpy as np
from jax import lax
from jax.experimental import pallas as pl
from jax.experimental.pallas import tpu as pltpu

# dot(A, B^T): contract last dim of both operands (MXU-native, no materialized
# transpose) — same dimension numbers the reference flash-attention kernel uses.
_TRANS_B_DIMS = (((1,), (1,)), ((), ()))


def han_meta_kernel(table_ref, title_ref, idx_ref, tidx_ref, mask_ref, out_ref):
    N, D = table_ref.shape            # N = B * P (flattened job-embedding table)
    NT, T = title_ref.shape
    BB, P, K = idx_ref.shape          # BB batches handled per grid step
    M = BB * P                        # rows handled per grid step
    TP = out_ref.shape[-1]            # lane-padded graph width (multiple of 128)

    # Focal rows for this grid step are rows [i*M, i*M+M) of the resident table
    # (avoids shipping `inputs` twice).
    row0 = pl.multiple_of(pl.program_id(0) * M, M)
    focal = table_ref[pl.ds(row0, M), :]                             # (M, D) cdt
    table = table_ref[...]                                           # (N, D) cdt

    # Collapse (BB, P) -> M; lane dim K unchanged (cheap, layout-preserving).
    idx = idx_ref[...].reshape(M, K)                                 # flat refs into table
    tidx = tidx_ref[...].reshape(M, K)                               # refs into titles
    mask = mask_ref[...].reshape(M, K).astype(jnp.float32)           # 1.0 valid, 0.0 pad

    # --- attention scores -------------------------------------------------------
    # One MXU matmul gives the scores against EVERY candidate row:
    #   scores[m, n] = <focal[m], table[n]>                          (M, N) f32
    # then the K referenced columns per row are extracted with one-hot masked
    # lane-reduces (VPU select + XLU reduce; no further MXU passes).
    # TODO(synk): for large N, replace the resident-table formulation with a
    # scalar-prefetch / DMA row gather (asymptotically the right thing).
    scores = lax.dot_general(focal, table, _TRANS_B_DIMS,
                             preferred_element_type=jnp.float32)     # (M, N)

    iota_n = lax.broadcasted_iota(jnp.int32, (M, N), 1)
    raw_cols = []
    for k in range(K):
        sel = jnp.where(idx[:, k:k + 1] == iota_n, scores, 0.0)      # (M, N)
        raw_cols.append(jnp.sum(sel, axis=-1, keepdims=True))        # (M, 1)
    raw = jnp.concatenate(raw_cols, axis=-1)                         # (M, K)

    # --- masked softmax over the K refs (f32) -----------------------------------
    # (torch uses un-stabilized exp()/sum(); max-subtraction is mathematically
    # identical and overflow-safe — intentional.)
    masked = jnp.where(mask > 0, raw, jnp.float32(-1e30))
    mmax = jnp.max(masked, axis=-1, keepdims=True)
    e = jnp.exp(masked - mmax) * mask
    denom = jnp.sum(e, axis=-1, keepdims=True)
    sim = e / jnp.where(denom > 0, denom, 1.0)                       # all-masked rows -> 0

    # --- weighted title aggregation ---------------------------------------------
    # Scatter the K softmax weights into a (M, NT) weight matrix (K tiny VPU
    # one-hot accumulates; duplicate titles sum correctly), then ONE matmul
    #   graph = W @ titles                                           (M, T)
    # Kept in f32 (weights carry softmax precision; NT/T are small), the big
    # bf16 MXU win is the scores matmul above.
    iota_t = lax.broadcasted_iota(jnp.int32, (M, NT), 1)
    titles_f32 = title_ref[...].astype(jnp.float32)                  # exact cast
    w = jnp.zeros((M, NT), jnp.float32)
    for k in range(K):
        oh_t = (tidx[:, k:k + 1] == iota_t).astype(jnp.float32)      # (M, NT) one-hot
        w = w + sim[:, k:k + 1] * oh_t
    graph = jnp.dot(w, titles_f32, preferred_element_type=jnp.float32)   # (M, T) MXU

    # --- lane-dense store: graph in lanes [0, T), zero padding to a full 128 tile
    if TP > T:
        graph = jnp.concatenate(
            [graph, jnp.zeros((M, TP - T), jnp.float32)], axis=-1)
    out_ref[...] = graph.reshape(BB, P, TP)


def han_meta(inputs, title_emb, ref_idx, title_idx, ref_mask, *,
             compute_dtype=jnp.float32, batch_block=None):
    """Pallas HANMeta forward. Returns (B*P, D+T) float32 (== torch.cat(emb_updated, 0))."""
    B, P, D = inputs.shape
    NT, T = title_emb.shape
    K = ref_idx.shape[-1]
    N = B * P
    TP = ((T + 127) // 128) * 128          # lane-dense padded graph width

    if batch_block is None:
        # Aim for >=128 rows per grid step (fills the MXU M dim, amortizes the
        # ~0.35us per-step overhead).  On v7x, prefer an even grid (2 TCs).
        batch_block = min(B, max(1, pl.cdiv(128, P)))
    while B % batch_block:
        batch_block -= 1
    BB = batch_block
    grid = (B // BB,)

    # Tables in compute_dtype (bf16 on v6e/v7x halves traffic & doubles MXU rate
    # for the dominant scores matmul); indices int32, mask f32.  The job table is
    # the flattened inputs (focal rows are sliced from it in-kernel, so inputs are
    # not shipped twice).
    table = inputs.reshape(N, D).astype(compute_dtype)
    titles = title_emb.astype(compute_dtype)
    idx = ref_idx.astype(jnp.int32)
    tidx = title_idx.astype(jnp.int32)
    mask = ref_mask.astype(jnp.float32)

    graph_pad = pl.pallas_call(
        han_meta_kernel,
        out_shape=jax.ShapeDtypeStruct((B, P, TP), jnp.float32),
        grid=grid,
        in_specs=[
            # Resident tables: constant index_map -> DMA'd once, reused each step.
            # TODO(synk): for large N*D, single-buffer these / re-budget for the
            # 64 MiB VMEM on v7x (or tile along N / DMA-gather rows from HBM).
            pl.BlockSpec((N, D), lambda i: (0, 0)),          # job-embedding table
            pl.BlockSpec((NT, T), lambda i: (0, 0)),         # title-embedding table
            pl.BlockSpec((BB, P, K), lambda i: (i, 0, 0)),   # ref indices
            pl.BlockSpec((BB, P, K), lambda i: (i, 0, 0)),   # title indices
            pl.BlockSpec((BB, P, K), lambda i: (i, 0, 0)),   # validity mask
        ],
        out_specs=pl.BlockSpec((BB, P, TP), lambda i: (i, 0, 0)),
        compiler_params=pltpu.CompilerParams(dimension_semantics=("parallel",)),
    )(table, titles, idx, tidx, mask)

    graph = graph_pad.reshape(N, TP)[:, :T]
    # The focal half of the torch output is a verbatim copy of `inputs`; concat it
    # here (layout plumbing, keeps the focal half bit-exact even on the bf16 path)
    # instead of re-storing it from the kernel.
    return jnp.concatenate([inputs.reshape(N, D).astype(jnp.float32), graph], axis=1)


def reference_numpy(inputs, title_emb, ref_idx, title_idx, ref_mask):
    """Direct numpy transcription of the torch loop (using the preprocessed refs)."""
    B, P, D = inputs.shape
    T = title_emb.shape[1]
    flat = inputs.reshape(B * P, D)
    out = np.zeros((B, P, D + T), np.float32)
    for i in range(B):
        for pos in range(P):
            out[i, pos, :D] = inputs[i, pos]
            valid = ref_mask[i, pos] > 0
            if valid.sum() == 0:        # yr == 0 or no metapath rows -> stays zero
                continue
            refs = flat[ref_idx[i, pos][valid]]            # (k, D)
            raw = refs @ inputs[i, pos]                    # (k,)
            sim = np.exp(raw) / np.exp(raw).sum()
            t = title_emb[title_idx[i, pos][valid]]        # (k, T)
            out[i, pos, D:] = sim @ t
    return out.reshape(B * P, D + T)


if __name__ == "__main__":
    B, P, D = 2, 8, 32        # batch, job positions per person, job-embedding dim
    T, NT = 16, 10            # title-embedding dim, number of titles
    K = 4                     # max metapath refs per (person, position)

    key = jax.random.PRNGKey(0)
    k_in, k_title, k_yr, k_nref, k_bp, k_ji, k_ti = jax.random.split(key, 7)

    inputs = jax.random.normal(k_in, (B, P, D), jnp.float32)
    title_emb_mat = jax.random.normal(k_title, (NT, T), jnp.float32)

    # Module inputs that only feed the (host-side) pandas lookup:
    emp_ids = jnp.arange(B, dtype=jnp.int32)                         # 'E0', 'E1', ...
    end_yrs = jax.random.randint(k_yr, (B, P), 0, 5)                 # 0 => skip
    batch_label = jnp.zeros((B,), jnp.float32)

    # Host-side substitute for the df_metapath filtering (pandas + string parsing
    # has no Pallas equivalent): padded ref tensors + mask, deterministic.
    # TODO(synk): real deployments would build these from the metapath dataframe.
    n_refs = jax.random.randint(k_nref, (B, P), 0, K + 1)
    ref_mask = ((jnp.arange(K)[None, None, :] < n_refs[:, :, None]) &
                (end_yrs[:, :, None] > 0)).astype(jnp.float32)
    batch_pos = jax.random.randint(k_bp, (B, P, K), 0, B)
    job_index = jax.random.randint(k_ji, (B, P, K), 0, P)
    ref_idx = (batch_pos * P + job_index).astype(jnp.int32)          # flat into (B*P, D)
    title_idx = jax.random.randint(k_ti, (B, P, K), 0, NT).astype(jnp.int32)

    # f32 path: tight check against the numpy transcription of the torch loop.
    out = jax.block_until_ready(
        han_meta(inputs, title_emb_mat, ref_idx, title_idx, ref_mask))
    ref = reference_numpy(np.asarray(inputs), np.asarray(title_emb_mat),
                          np.asarray(ref_idx), np.asarray(title_idx),
                          np.asarray(ref_mask))
    assert out.shape == (B * P, D + T), out.shape
    np.testing.assert_allclose(np.asarray(out), ref, rtol=1e-5, atol=1e-5)

    # bf16-table path (v6e/v7x MXU-friendly): compare against the same reference
    # evaluated on bf16-rounded tables (softmax/accumulation stay f32 in-kernel).
    out_bf16 = jax.block_until_ready(
        han_meta(inputs, title_emb_mat, ref_idx, title_idx, ref_mask,
                 compute_dtype=jnp.bfloat16))
    inputs_r = inputs.astype(jnp.bfloat16).astype(jnp.float32)
    titles_r = title_emb_mat.astype(jnp.bfloat16).astype(jnp.float32)
    ref_b = reference_numpy(np.asarray(inputs_r), np.asarray(titles_r),
                            np.asarray(ref_idx), np.asarray(title_idx),
                            np.asarray(ref_mask))
    np.testing.assert_allclose(np.asarray(out_bf16)[:, :D],
                               np.asarray(inputs).reshape(B * P, D),
                               rtol=0, atol=0)
    np.testing.assert_allclose(np.asarray(out_bf16)[:, D:], ref_b[:, D:],
                               rtol=1e-3, atol=1e-3)
    print("KERNEL_OK")
</pallas_src>

<mosaic_0001>
module attributes {stable_mosaic.version = 11 : i64} {
  func.func @han_meta_kernel(%arg0: i32, %arg1: memref<16x32xf32, #tpu.memory_space<vmem>>, %arg2: memref<10x16xf32, #tpu.memory_space<vmem>>, %arg3: memref<2x8x4xi32, #tpu.memory_space<vmem>>, %arg4: memref<2x8x4xi32, #tpu.memory_space<vmem>>, %arg5: memref<2x8x4xf32, #tpu.memory_space<vmem>>, %arg6: memref<2x8x128xf32, #tpu.memory_space<vmem>>) attributes {dimension_semantics = [#tpu.dimension_semantics<parallel>], iteration_bounds = array<i64: 1>, scalar_prefetch = 0 : i64, scratch_operands = 0 : i64, tpu.core_type = #tpu.core_type<tc>, window_params = [{pipeline_mode = #tpu.pipeline_mode<synchronous>, transform_indices = @transform_0, window_bounds = array<i64: 16, 32>}, {pipeline_mode = #tpu.pipeline_mode<synchronous>, transform_indices = @transform_1, window_bounds = array<i64: 10, 16>}, {transform_indices = @transform_2, window_bounds = array<i64: 2, 8, 4>}, {transform_indices = @transform_3, window_bounds = array<i64: 2, 8, 4>}, {transform_indices = @transform_4, window_bounds = array<i64: 2, 8, 4>}, {transform_indices = @transform_5, window_bounds = array<i64: 2, 8, 128>}]} {
    %c16_i32 = arith.constant 16 : i32
    %0 = arith.muli %arg0, %c16_i32 : i32
    %1 = tpu.assume_multiple %0, 16 : i32
    %2 = arith.index_cast %1 : i32 to index
    %c0 = arith.constant 0 : index
    %3 = vector.load %arg1[%2, %c0] : memref<16x32xf32, #tpu.memory_space<vmem>>, vector<16x32xf32>
    %c0_0 = arith.constant 0 : index
    %c0_1 = arith.constant 0 : index
    %4 = vector.load %arg1[%c0_0, %c0_1] : memref<16x32xf32, #tpu.memory_space<vmem>>, vector<16x32xf32>
    %c0_2 = arith.constant 0 : index
    %c0_3 = arith.constant 0 : index
    %c0_4 = arith.constant 0 : index
    %5 = vector.load %arg3[%c0_2, %c0_3, %c0_4] : memref<2x8x4xi32, #tpu.memory_space<vmem>>, vector<2x8x4xi32>
    %6 = vector.shape_cast %5 : vector<2x8x4xi32> to vector<16x4xi32>
    %c0_5 = arith.constant 0 : index
    %c0_6 = arith.constant 0 : index
    %c0_7 = arith.constant 0 : index
    %7 = vector.load %arg4[%c0_5, %c0_6, %c0_7] : memref<2x8x4xi32, #tpu.memory_space<vmem>>, vector<2x8x4xi32>
    %8 = vector.shape_cast %7 : vector<2x8x4xi32> to vector<16x4xi32>
    %c0_8 = arith.constant 0 : index
    %c0_9 = arith.constant 0 : index
    %c0_10 = arith.constant 0 : index
    %9 = vector.load %arg5[%c0_8, %c0_9, %c0_10] : memref<2x8x4xf32, #tpu.memory_space<vmem>>, vector<2x8x4xf32>
    %10 = vector.shape_cast %9 : vector<2x8x4xf32> to vector<16x4xf32>
    %cst = arith.constant dense<0.000000e+00> : vector<16x16xf32>
    %11 = tpu.matmul %3, %4, %cst {dimension_numbers = #tpu.dot_dimension_numbers<[1], [1], [0], [0], [0, 0, 1, 0], [], []>} : vector<16x32xf32>, vector<16x32xf32>, vector<16x16xf32> -> vector<16x16xf32>
    %12 = tpu.iota {dimensions = array<i32: 1>} : vector<16x16xi32>
    %13 = vector.extract_strided_slice %6 {offsets = [0, 0], sizes = [16, 1], strides = [1, 1]} : vector<16x4xi32> to vector<16x1xi32>
    %14 = vector.broadcast %13 : vector<16x1xi32> to vector<16x16xi32>
    %15 = arith.cmpi eq, %14, %12 : vector<16x16xi32>
    %cst_11 = arith.constant 0.000000e+00 : f32
    %16 = vector.broadcast %cst_11 : f32 to vector<16x16xf32>
    %17 = arith.select %15, %11, %16 : vector<16x16xi1>, vector<16x16xf32>
    %cst_12 = arith.constant dense<0.000000e+00> : vector<16xf32>
    %18 = vector.multi_reduction <add>, %17, %cst_12 [1] : vector<16x16xf32> to vector<16xf32>
    %19 = vector.shape_cast %18 : vector<16xf32> to vector<16x1xf32>
    %20 = vector.extract_strided_slice %6 {offsets = [0, 1], sizes = [16, 1], strides = [1, 1]} : vector<16x4xi32> to vector<16x1xi32>
    %21 = vector.broadcast %20 : vector<16x1xi32> to vector<16x16xi32>
    %22 = arith.cmpi eq, %21, %12 : vector<16x16xi32>
    %cst_13 = arith.constant 0.000000e+00 : f32
    %23 = vector.broadcast %cst_13 : f32 to vector<16x16xf32>
    %24 = arith.select %22, %11, %23 : vector<16x16xi1>, vector<16x16xf32>
    %cst_14 = arith.constant dense<0.000000e+00> : vector<16xf32>
    %25 = vector.multi_reduction <add>, %24, %cst_14 [1] : vector<16x16xf32> to vector<16xf32>
    %26 = vector.shape_cast %25 : vector<16xf32> to vector<16x1xf32>
    %27 = vector.extract_strided_slice %6 {offsets = [0, 2], sizes = [16, 1], strides = [1, 1]} : vector<16x4xi32> to vector<16x1xi32>
    %28 = vector.broadcast %27 : vector<16x1xi32> to vector<16x16xi32>
    %29 = arith.cmpi eq, %28, %12 : vector<16x16xi32>
    %cst_15 = arith.constant 0.000000e+00 : f32
    %30 = vector.broadcast %cst_15 : f32 to vector<16x16xf32>
    %31 = arith.select %29, %11, %30 : vector<16x16xi1>, vector<16x16xf32>
    %cst_16 = arith.constant dense<0.000000e+00> : vector<16xf32>
    %32 = vector.multi_reduction <add>, %31, %cst_16 [1] : vector<16x16xf32> to vector<16xf32>
    %33 = vector.shape_cast %32 : vector<16xf32> to vector<16x1xf32>
    %34 = vector.extract_strided_slice %6 {offsets = [0, 3], sizes = [16, 1], strides = [1, 1]} : vector<16x4xi32> to vector<16x1xi32>
    %35 = vector.broadcast %34 : vector<16x1xi32> to vector<16x16xi32>
    %36 = arith.cmpi eq, %35, %12 : vector<16x16xi32>
    %cst_17 = arith.constant 0.000000e+00 : f32
    %37 = vector.broadcast %cst_17 : f32 to vector<16x16xf32>
    %38 = arith.select %36, %11, %37 : vector<16x16xi1>, vector<16x16xf32>
    %cst_18 = arith.constant dense<0.000000e+00> : vector<16xf32>
    %39 = vector.multi_reduction <add>, %38, %cst_18 [1] : vector<16x16xf32> to vector<16xf32>
    %40 = vector.shape_cast %39 : vector<16xf32> to vector<16x1xf32>
    %41 = tpu.concatenate %19, %26, %33, %40 in 1 : vector<16x1xf32>, vector<16x1xf32>, vector<16x1xf32>, vector<16x1xf32> -> vector<16x4xf32>
    %cst_19 = arith.constant 0.000000e+00 : f32
    %42 = vector.broadcast %cst_19 : f32 to vector<16x4xf32>
    %43 = arith.cmpf ogt, %10, %42 : vector<16x4xf32>
    %cst_20 = arith.constant -1.000000e+30 : f32
    %44 = vector.broadcast %cst_20 : f32 to vector<16x4xf32>
    %45 = arith.select %43, %41, %44 : vector<16x4xi1>, vector<16x4xf32>
    %cst_21 = arith.constant dense<0xFF800000> : vector<16xf32>
    %46 = vector.multi_reduction <maximumf>, %45, %cst_21 [1] : vector<16x4xf32> to vector<16xf32>
    %47 = vector.shape_cast %46 : vector<16xf32> to vector<16x1xf32>
    %48 = vector.broadcast %47 : vector<16x1xf32> to vector<16x4xf32>
    %49 = arith.subf %45, %48 : vector<16x4xf32>
    %50 = math.exp %49 : vector<16x4xf32>
    %51 = arith.mulf %50, %10 : vector<16x4xf32>
    %cst_22 = arith.constant dense<0.000000e+00> : vector<16xf32>
    %52 = vector.multi_reduction <add>, %51, %cst_22 [1] : vector<16x4xf32> to vector<16xf32>
    %53 = vector.shape_cast %52 : vector<16xf32> to vector<16x1xf32>
    %cst_23 = arith.constant 0.000000e+00 : f32
    %54 = vector.broadcast %cst_23 : f32 to vector<16x1xf32>
    %55 = arith.cmpf ogt, %53, %54 : vector<16x1xf32>
    %cst_24 = arith.constant 1.000000e+00 : f32
    %56 = vector.broadcast %cst_24 : f32 to vector<16x1xf32>
    %57 = arith.select %55, %53, %56 : vector<16x1xi1>, vector<16x1xf32>
    %58 = vector.broadcast %57 : vector<16x1xf32> to vector<16x4xf32>
    %59 = arith.divf %51, %58 : vector<16x4xf32>
    %60 = tpu.iota {dimensions = array<i32: 1>} : vector<16x10xi32>
    %c0_25 = arith.constant 0 : index
    %c0_26 = arith.constant 0 : index
    %61 = vector.load %arg2[%c0_25, %c0_26] : memref<10x16xf32, #tpu.memory_space<vmem>>, vector<10x16xf32>
    %cst_27 = arith.constant 0.000000e+00 : f32
    %62 = vector.broadcast %cst_27 : f32 to vector<16x10xf32>
    %63 = vector.extract_strided_slice %8 {offsets = [0, 0], sizes = [16, 1], strides = [1, 1]} : vector<16x4xi32> to vector<16x1xi32>
    %64 = vector.broadcast %63 : vector<16x1xi32> to vector<16x10xi32>
    %65 = arith.cmpi eq, %64, %60 : vector<16x10xi32>
    %66 = arith.extui %65 : vector<16x10xi1> to vector<16x10xi32>
    %67 = arith.sitofp %66 : vector<16x10xi32> to vector<16x10xf32>
    %68 = vector.extract_strided_slice %59 {offsets = [0, 0], sizes = [16, 1], strides = [1, 1]} : vector<16x4xf32> to vector<16x1xf32>
    %69 = vector.broadcast %68 : vector<16x1xf32> to vector<16x10xf32>
    %70 = arith.mulf %69, %67 : vector<16x10xf32>
    %71 = arith.addf %62, %70 : vector<16x10xf32>
    %72 = vector.extract_strided_slice %8 {offsets = [0, 1], sizes = [16, 1], strides = [1, 1]} : vector<16x4xi32> to vector<16x1xi32>
    %73 = vector.broadcast %72 : vector<16x1xi32> to vector<16x10xi32>
    %74 = arith.cmpi eq, %73, %60 : vector<16x10xi32>
    %75 = arith.extui %74 : vector<16x10xi1> to vector<16x10xi32>
    %76 = arith.sitofp %75 : vector<16x10xi32> to vector<16x10xf32>
    %77 = vector.extract_strided_slice %59 {offsets = [0, 1], sizes = [16, 1], strides = [1, 1]} : vector<16x4xf32> to vector<16x1xf32>
    %78 = vector.broadcast %77 : vector<16x1xf32> to vector<16x10xf32>
    %79 = arith.mulf %78, %76 : vector<16x10xf32>
    %80 = arith.addf %71, %79 : vector<16x10xf32>
    %81 = vector.extract_strided_slice %8 {offsets = [0, 2], sizes = [16, 1], strides = [1, 1]} : vector<16x4xi32> to vector<16x1xi32>
    %82 = vector.broadcast %81 : vector<16x1xi32> to vector<16x10xi32>
    %83 = arith.cmpi eq, %82, %60 : vector<16x10xi32>
    %84 = arith.extui %83 : vector<16x10xi1> to vector<16x10xi32>
    %85 = arith.sitofp %84 : vector<16x10xi32> to vector<16x10xf32>
    %86 = vector.extract_strided_slice %59 {offsets = [0, 2], sizes = [16, 1], strides = [1, 1]} : vector<16x4xf32> to vector<16x1xf32>
    %87 = vector.broadcast %86 : vector<16x1xf32> to vector<16x10xf32>
    %88 = arith.mulf %87, %85 : vector<16x10xf32>
    %89 = arith.addf %80, %88 : vector<16x10xf32>
    %90 = vector.extract_strided_slice %8 {offsets = [0, 3], sizes = [16, 1], strides = [1, 1]} : vector<16x4xi32> to vector<16x1xi32>
    %91 = vector.broadcast %90 : vector<16x1xi32> to vector<16x10xi32>
    %92 = arith.cmpi eq, %91, %60 : vector<16x10xi32>
    %93 = arith.extui %92 : vector<16x10xi1> to vector<16x10xi32>
    %94 = arith.sitofp %93 : vector<16x10xi32> to vector<16x10xf32>
    %95 = vector.extract_strided_slice %59 {offsets = [0, 3], sizes = [16, 1], strides = [1, 1]} : vector<16x4xf32> to vector<16x1xf32>
    %96 = vector.broadcast %95 : vector<16x1xf32> to vector<16x10xf32>
    %97 = arith.mulf %96, %94 : vector<16x10xf32>
    %98 = arith.addf %89, %97 : vector<16x10xf32>
    %cst_28 = arith.constant dense<0.000000e+00> : vector<16x16xf32>
    %99 = tpu.matmul %98, %61, %cst_28 {dimension_numbers = #tpu.dot_dimension_numbers<[1], [0], [0], [1], [0, 0, 1, 1], [], []>} : vector<16x10xf32>, vector<10x16xf32>, vector<16x16xf32> -> vector<16x16xf32>
    %cst_29 = arith.constant 0.000000e+00 : f32
    %100 = vector.broadcast %cst_29 : f32 to vector<16x112xf32>
    %101 = tpu.concatenate %99, %100 in 1 : vector<16x16xf32>, vector<16x112xf32> -> vector<16x128xf32>
    %102 = vector.shape_cast %101 : vector<16x128xf32> to vector<2x8x128xf32>
    %c0_30 = arith.constant 0 : index
    %c0_31 = arith.constant 0 : index
    %c0_32 = arith.constant 0 : index
    %103 = vector.load %arg6[%c0_30, %c0_31, %c0_32] : memref<2x8x128xf32, #tpu.memory_space<vmem>>, vector<2x8x128xf32>
    tpu.vector_store %arg6[%c0_30, %c0_31, %c0_32], %102 {strides = array<i32>} : memref<2x8x128xf32, #tpu.memory_space<vmem>>, vector<2x8x128xf32>,
    return
  }
  func.func @transform_0(%arg0: i32) -> (i32, i32) {
    %c0_i32 = arith.constant 0 : i32
    %c0_i32_0 = arith.constant 0 : i32
    %c0_i32_1 = arith.constant 0 : i32
    return %c0_i32, %c0_i32_0 : i32, i32
  }
  func.func @transform_1(%arg0: i32) -> (i32, i32) {
    %c0_i32 = arith.constant 0 : i32
    %c0_i32_0 = arith.constant 0 : i32
    %c0_i32_1 = arith.constant 0 : i32
    return %c0_i32, %c0_i32_0 : i32, i32
  }
  func.func @transform_2(%arg0: i32) -> (i32, i32, i32) {
    %c0_i32 = arith.constant 0 : i32
    %c0_i32_0 = arith.constant 0 : i32
    %c0_i32_1 = arith.constant 0 : i32
    return %arg0, %c0_i32, %c0_i32_0 : i32, i32, i32
  }
  func.func @transform_3(%arg0: i32) -> (i32, i32, i32) {
    %c0_i32 = arith.constant 0 : i32
    %c0_i32_0 = arith.constant 0 : i32
    %c0_i32_1 = arith.constant 0 : i32
    return %arg0, %c0_i32, %c0_i32_0 : i32, i32, i32
  }
  func.func @transform_4(%arg0: i32) -> (i32, i32, i32) {
    %c0_i32 = arith.constant 0 : i32
    %c0_i32_0 = arith.constant 0 : i32
    %c0_i32_1 = arith.constant 0 : i32
    return %arg0, %c0_i32, %c0_i32_0 : i32, i32, i32
  }
  func.func @transform_5(%arg0: i32) -> (i32, i32, i32) {
    %c0_i32 = arith.constant 0 : i32
    %c0_i32_0 = arith.constant 0 : i32
    %c0_i32_1 = arith.constant 0 : i32
    return %arg0, %c0_i32, %c0_i32_0 : i32, i32, i32
  }
}

</mosaic_0001>

<bundles_post_ra>
// kernel: tpu_custom_call.1
= control target key start
LH: loop header
LB: loop body
LE: loop exit
PB: predicated region body
PF: predicated region fallthrough
CT: control target
= control target key end

     0   :  { %vm33_vm0 = vcmask 261120   ;;  %v546_v4 = vmov 0   ;;  %s683_s0 = inlined_call_operand.vmem [shape: f32[16,32], index: 0, kind: input, shape index: {}]   ;;  %s684_s1 = inlined_call_operand.vmem [shape: f32[10,16], index: 1, kind: input, shape index: {}]   ;;  %s685_s2 = inlined_call_operand.vmem [shape: s32[2,8,4], index: 2, kind: input, shape index: {}]   ;;  %s686_s3 = inlined_call_operand.vmem [shape: s32[2,8,4], index: 3, kind: input, shape index: {}]   ;;  %s687_s4 = inlined_call_operand.vmem [shape: f32[2,8,4], index: 4, kind: input, shape index: {}]   ;;  %s688_s5 = inlined_call_operand.hbm [shape: f32[2,8,128], index: 5, kind: output, shape index: {}]  }
   0x1   :  { %v25_v0 = vld [vmem:[%s683_s0] sm:$0xff]  ;;  %v26_v1 = vld [vmem:[%s683_s0 + $0x8] sm:$0xff]  ;;  %vm474_vm1 = vmpackc.low %vm33_vm0, %vm33_vm0  ;;  %496 = vset.pattern.permute.xlu1 %v546_v4  ;;  %494 = vset.pattern.permute.xlu0 %v546_v4 }
   0x2   :  { %v28_v2 = vld [vmem:[%s685_s2 + $0x8] sm:$0xff]  ;;  %v473_v3 = vpack.c.bf16 %v26_v1, %v25_v0  ;;  %463 = vmatprep.mubr.msk.f32.mxu0 %vm33_vm0, %v25_v0  ;;  %v27_v5 = vld [vmem:[%s685_s2] sm:$0xff] }
   0x3   :  { %127 = vperm.xlu1 %496, %v28_v2  }
   0x4   :  { %10 = vsyncpa [#allocation3], 0  ;;  %475 = vmatprep.subr.msk.bf16.mxu0 %vm474_vm1, %v473_v3  ;;  %124 = vperm.xlu0 %494, %v27_v5   ;;  %v547_v6 = vmov 1   ;;  %v548_v7 = vmov 2   ;;  %v549_v8 = vmov 3   ;;  %v121_v12 = vlaneseq  ;;  %v31_v42 = vld [vmem:[%s687_s4] sm:$0xff] }
   0x5   :  { %478 = vmatpush3.bf16.xpose.msk.msra.mxu0 %vm474_vm1, %v473_v3  ;;  %vm133_vm3 = vcmask 130048   ;;  %vm188_vm11 = vcmask 7168   ;;  %vm194_vm12 = vcmask 23552   ;;  %v32_v44 = vld [vmem:[%s687_s4 + $0x8] sm:$0xff]  ;;  %vm191_vm13 = vcmask 15360  }
   0x6   :  { %v610_v14 = vand.u32 127, %v121_v12  ;;  %vm197_vm14 = vcmp.gt.f32.partialorder %v31_v42, 0.0  ;;  %vm201_vm15 = vcmask 31744  }
   0x7   :  { %497 = vset.pattern.permute.xlu1 %v547_v6 }
   0x8   :  { %144 = vperm.xlu1 %497, %v28_v2   ;;  %495 = vset.pattern.permute.xlu0 %v547_v6 }
   0x9   :  { %141 = vperm.xlu0 %495, %v27_v5  }
   0xc   :  { %464 = vmatmul.mubr.msk.f32.vlgmr.msra.gmra.mrb[0].mxu0 %vm33_vm0, %v26_v1  ;;  %498 = vset.pattern.permute.xlu1 %v548_v7  ;;  %vm198_vm0 = vcmp.gt.f32.partialorder %v32_v44, 0.0 }
   0xd   :  { %157 = vperm.xlu1 %498, %v27_v5   ;;  %499 = vset.pattern.permute.xlu0 %v548_v7 }
   0xe   :  { %160 = vperm.xlu0 %499, %v28_v2  }
  0x11   :  { %500 = vset.pattern.permute.xlu1 %v549_v8 }
  0x12   :  { %173 = vperm.xlu1 %500, %v27_v5   ;;  %502 = vset.pattern.permute.xlu0 %v547_v6 }
  0x16   :  { %176 = vperm.xlu1 %500, %v28_v2  }
  0x1a   :  { %501 = vset.pattern.permute.xlu1 %v546_v4 }
  0x82   :  { %v128_v9 = vpop.permute.xlu1 %127 }
  0x83   :  { %v125_v10 = vpop.permute.xlu0 %124  ;;  %vm130_vm4 = vcmp.eq.s32.totalorder %v128_v9, %v610_v14  ;;  %v29_v9 = vld [vmem:[%s686_s3] sm:$0xff] }
  0x84   :  { %vm129_vm9 = vcmp.eq.s32.totalorder %v125_v10, %v610_v14  ;;  %v30_v10 = vld [vmem:[%s686_s3 + $0x8] sm:$0xff] }
  0x87   :  { %v145_v11 = vpop.permute.xlu1 %144 }
  0x88   :  { %v142_v13 = vpop.permute.xlu0 %141  ;;  %vm147_vm5 = vcmp.eq.s32.totalorder %v145_v11, %v610_v14 }
  0x89   :  { %vm146_vm2 = vcmp.eq.s32.totalorder %v142_v13, %v610_v14 }
  0x8c   :  { %v158_v15 = vpop.permute.xlu1 %157 }
  0x8d   :  { %vm162_vm6 = vcmp.eq.s32.totalorder %v158_v15, %v610_v14  ;;  %v161_v17 = vpop.permute.xlu0 %160 }
  0x8e   :  { %vm163_vm7 = vcmp.eq.s32.totalorder %v161_v17, %v610_v14 }
  0x91   :  { %v174_v22 = vpop.permute.xlu1 %173 }
  0x92   :  { %vm178_vm8 = vcmp.eq.s32.totalorder %v174_v22, %v610_v14 }
  0x95   :  { %v177_v30 = vpop.permute.xlu1 %176 }
  0x96   :  { %vm179_vm10 = vcmp.eq.s32.totalorder %v177_v30, %v610_v14 }
  0xdf   :  { %v465_v16 = vpop.f32.mrb[0].mxu0 }
  0xe0   :  { %v112_v18 = vpop.f32.mrb[1].mxu0  ;;  %v132_v19 = vsel %vm130_vm4, %v465_v16, 0.0  ;;  %v149_v24 = vsel %vm147_vm5, %v465_v16, 0.0  ;;  %v165_v28 = vsel %vm163_vm7, %v465_v16, 0.0  ;;  %v181_v35 = vsel %vm179_vm10, %v465_v16, 0.0 }
  0xe1   :  { %v137_v20 = vsel %vm133_vm3, %v132_v19, 0.0  ;;  %v148_v21 = vsel %vm146_vm2, %v112_v18, 0.0  ;;  %v164_v25 = vsel %vm162_vm6, %v112_v18, 0.0  ;;  %v153_v26 = vsel %vm133_vm3, %v149_v24, 0.0 }
  0xe2   :  { %138 = vadd.xlane.f32.xlu0 %v137_v20  ;;  %v150_v23 = vsel %vm133_vm3, %v148_v21, 0.0  ;;  %v166_v27 = vsel %vm133_vm3, %v164_v25, 0.0  ;;  %v180_v29 = vsel %vm178_vm8, %v112_v18, 0.0  ;;  %v169_v31 = vsel %vm133_vm3, %v165_v28, 0.0  ;;  %v230_v20 = vld [vmem:[%s684_s1] sm:$0xff] }
  0xe3   :  { %151 = vadd.xlane.f32.xlu1 %v150_v23  ;;  %v182_v32 = vsel %vm133_vm3, %v180_v29, 0.0  ;;  %v131_v33 = vsel %vm129_vm9, %v112_v18, 0.0  ;;  %v185_v36 = vsel %vm133_vm3, %v181_v35, 0.0  ;;  %v231_v21 = vld [vmem:[%s684_s1 + $0x8] sm:$0x3]  ;;  %vm337_vm4 = vcmask 1041408  }
  0xe4   :  { %v134_v34 = vsel %vm133_vm3, %v131_v33, 0.0  ;;  %vm550_vm5 = vmmov 1   ;;  %s552_s1 = smov [#allocation2]  }
  0xe5   :  { %vm480_vm6 = vmpackc.low %vm337_vm4, %vm550_vm5  ;;  %s425_s9 = sshll.u32 %s552_s1, 4  ;;  %s426_s9 = int_to_ptr.vmem [resolvable:$true] %s425_s9 }
  0xe6   :  { %154 = vadd.xlane.f32.xlu0 %v153_v26  ;;  %s522_s10 = scalar_lea.vmem %s426_s9, 256  ;;  %p527_p1 = scmp.lt.s32.totalorder %s426_s9, %s426_s9 }
  0xe7   :  { %167 = vadd.xlane.f32.xlu1 %v166_v27  ;;  %p523_p0 = scmp.ne.s32.totalorder %s426_s9, %s522_s10  ;;  %p528_p2 = scmp.lt.s32.totalorder %s522_s10, %s522_s10 }
  0xe9   :  { %p529_p3 = por %p528_p2, %p527_p1 }
  0xea   :  { %170 = vadd.xlane.f32.xlu0 %v169_v31  ;;  %v551_v31 = vmov 0.0  }
  0xeb   :  { %183 = vadd.xlane.f32.xlu1 %v182_v32  ;;  %p530_p4 = pnand %p529_p3, %p523_p0 }
  0xee   :  { %135 = vadd.xlane.f32.xlu0 %v134_v34 }
  0xf2   :  { %186 = vadd.xlane.f32.xlu0 %v185_v36 }
 0x16f   :  { %v139_v37 = vpop.xlane.xlu0 %138 }
 0x170   :  { %v152_v38 = vpop.xlane.xlu1 %151 }
 0x173   :  { %v155_v39 = vpop.xlane.xlu0 %154 }
 0x174   :  { %v168_v40 = vpop.xlane.xlu1 %167  ;;  %v190_v48 = vsel %vm188_vm11, %v139_v37, %v155_v39 }
 0x177   :  { %v171_v41 = vpop.xlane.xlu0 %170 }
 0x178   :  { %v184_v46 = vpop.xlane.xlu1 %183  ;;  %v193_v50 = vsel %vm191_vm13, %v190_v48, %v171_v41 }
 0x17b   :  { %v136_v43 = vpop.xlane.xlu0 %135 }
 0x17c   :  { %v189_v45 = vsel %vm188_vm11, %v136_v43, %v152_v38 }
 0x17d   :  { %v192_v47 = vsel %vm191_vm13, %v189_v45, %v168_v40 }
 0x17e   :  { %v195_v49 = vsel %vm194_vm12, %v192_v47, %v184_v46 }
 0x17f   :  { %v187_v51 = vpop.xlane.xlu0 %186  ;;  %v199_v52 = vsel %vm197_vm14, %v195_v49, -1e+30 }
 0x180   :  { %v196_v53 = vsel %vm194_vm12, %v193_v50, %v187_v51  ;;  %v202_v54 = vsel %vm201_vm15, %v199_v52, -inf }
 0x181   :  { %203 = vmax.xlane.f32.xlu1 %v202_v54  ;;  %v200_v55 = vsel %vm198_vm0, %v196_v53, -1e+30 }
 0x182   :  { %v205_v56 = vsel %vm201_vm15, %v200_v55, -inf }
 0x183   :  { %206 = vmax.xlane.f32.xlu0 %v205_v56 }
 0x20e   :  { %v204_v57 = vpop.xlane.xlu1 %203 }
 0x20f   :  { %v208_v58 = vsub.f32 %v199_v52, %v204_v57 }
 0x210   :  { %v207_v59 = vpop.xlane.xlu0 %206 }
 0x211   :  { %v210_v60 = vmul.f32 1.442695, %v208_v58  ;;  %v209_v61 = vsub.f32 %v200_v55, %v207_v59 }
 0x213   :  { %514 = vpow2.f32 %v210_v60  ;;  %v212_v62 = vmul.f32 1.442695, %v209_v61 }
 0x215   :  { %516 = vpow2.f32 %v212_v62 }
 0x21d   :  { %v515_v63 = vpop.eup %514 }
 0x21e   :  { %v214_v0 = vmul.f32 %v515_v63, %v31_v42 }
 0x21f   :  { %v517_v1 = vpop.eup %516 }
 0x220   :  { %v216_v2 = vsel %vm201_vm15, %v214_v0, 0.0  ;;  %v215_v3 = vmul.f32 %v517_v1, %v32_v44 }
 0x221   :  { %217 = vadd.xlane.f32.xlu1 %v216_v2 }
 0x222   :  { %v219_v5 = vsel %vm201_vm15, %v215_v3, 0.0  ;;  %vm330_vm15 = vcmask 80896  }
 0x223   :  { %220 = vadd.xlane.f32.xlu0 %v219_v5 }
 0x232   :  { %233 = vperm.xlu1 %501, %v29_v9  }
 0x236   :  { %236 = vperm.xlu1 %501, %v30_v10  }
 0x239   :  { %259 = vperm.xlu0 %502, %v29_v9  }
 0x23a   :  { %503 = vset.pattern.permute.xlu1 %v547_v6 }
 0x23b   :  { %262 = vperm.xlu1 %503, %v30_v10  }
 0x23d   :  { %511 = vset.pattern.permute.xlu0 %v548_v7 }
 0x23f   :  { %504 = vset.pattern.permute.xlu1 %v548_v7 }
 0x240   :  { %283 = vperm.xlu1 %504, %v29_v9  }
 0x244   :  { %286 = vperm.xlu1 %504, %v30_v10  }
 0x248   :  { %505 = vset.pattern.permute.xlu1 %v549_v8 }
 0x249   :  { %307 = vperm.xlu1 %505, %v29_v9  }
 0x24d   :  { %506 = vset.pattern.permute.xlu1 %v546_v4 }
 0x2ae   :  { %v218_v11 = vpop.xlane.xlu1 %217 }
 0x2af   :  { %vm222_vm1 = vcmp.gt.f32.partialorder %v218_v11, 0.0 }
 0x2b0   :  { %v224_v12 = vsel %vm222_vm1, %v218_v11, 1.0  ;;  %v221_v13 = vpop.xlane.xlu0 %220 }
 0x2b1   :  { %518 = vrcp.f32 %v224_v12  ;;  %vm223_vm2 = vcmp.gt.f32.partialorder %v221_v13, 0.0 }
 0x2b2   :  { %v225_v15 = vsel %vm223_vm2, %v221_v13, 1.0 }
 0x2b3   :  { %520 = vrcp.f32 %v225_v15 }
 0x2b8   :  { %v260_v28 = vpop.permute.xlu0 %259 }
 0x2b9   :  { %vm264_vm7 = vcmp.eq.s32.totalorder %v260_v28, %v610_v14 }
 0x2ba   :  { %v442_v32 = vsel %vm264_vm7, 1.0, %v551_v31 }
 0x2bb   :  { %v519_v16 = vpop.eup %518 }
 0x2bc   :  { %v227_v17 = vmul.f32 %v519_v16, %v214_v0 }
 0x2bd   :  { %v521_v18 = vpop.eup %520 }
 0x2be   :  { %295 = vperm.xlu0 %511, %v227_v17   ;;  %v229_v19 = vmul.f32 %v521_v18, %v215_v3 }
 0x2c0   :  { %251 = vperm.xlu1 %506, %v229_v19  }
 0x2c2   :  { %512 = vset.pattern.permute.xlu0 %v549_v8 }
 0x2c3   :  { %310 = vperm.xlu0 %512, %v30_v10  }
 0x2c4   :  { %507 = vset.pattern.permute.xlu1 %v547_v6 }
 0x2c5   :  { %275 = vperm.xlu1 %507, %v229_v19  }
 0x2c9   :  { %508 = vset.pattern.permute.xlu1 %v548_v7  ;;  %v479_v7 = vpack.c.bf16 %v231_v21, %v230_v20 }
 0x2ca   :  { %299 = vperm.xlu1 %508, %v229_v19  }
 0x2cb   :  { %481 = vmatprep.subr.msk.bf16.mxu1 %vm480_vm6, %v479_v7 }
 0x2cc   :  { %484 = vmatpush3.bf16.msk.msra.mxu1 %vm480_vm6, %v479_v7 }
 0x2ce   :  { %509 = vset.pattern.permute.xlu1 %v546_v4  ;;  %v234_v4 = vpop.permute.xlu1 %233 }
 0x2cf   :  { %246 = vperm.xlu1 %509, %v227_v17   ;;  %vm238_vm8 = vcmp.eq.s32.totalorder %v234_v4, %v610_v14 }
 0x2d0   :  { %v440_v33 = vsel %vm238_vm8, 1.0, %v551_v31 }
 0x2d3   :  { %510 = vset.pattern.permute.xlu1 %v547_v6  ;;  %v237_v6 = vpop.permute.xlu1 %236 }
 0x2d4   :  { %271 = vperm.xlu1 %510, %v227_v17   ;;  %vm239_vm11 = vcmp.eq.s32.totalorder %v237_v6, %v610_v14 }
 0x2d5   :  { %v441_v43 = vsel %vm239_vm11, 1.0, %v551_v31 }
 0x2d7   :  { %v263_v22 = vpop.permute.xlu1 %262 }
 0x2d8   :  { %513 = vset.pattern.permute.xlu1 %v549_v8  ;;  %vm265_vm10 = vcmp.eq.s32.totalorder %v263_v22, %v610_v14 }
 0x2d9   :  { %319 = vperm.xlu1 %513, %v227_v17   ;;  %v443_v40 = vsel %vm265_vm10, 1.0, %v551_v31 }
 0x2db   :  { %v284_v8 = vpop.permute.xlu1 %283 }
 0x2dc   :  { %vm288_vm9 = vcmp.eq.s32.totalorder %v284_v8, %v610_v14 }
 0x2dd   :  { %323 = vperm.xlu1 %513, %v229_v19   ;;  %v444_v38 = vsel %vm288_vm9, 1.0, %v551_v31 }
 0x2df   :  { %v287_v23 = vpop.permute.xlu1 %286 }
 0x2e0   :  { %vm289_vm12 = vcmp.eq.s32.totalorder %v287_v23, %v610_v14 }
 0x2e1   :  { %v445_v44 = vsel %vm289_vm12, 1.0, %v551_v31 }
 0x2e3   :  { %v308_v24 = vpop.permute.xlu1 %307 }
 0x2e4   :  { %vm312_vm13 = vcmp.eq.s32.totalorder %v308_v24, %v610_v14 }
 0x2e5   :  { %v446_v45 = vsel %vm312_vm13, 1.0, %v551_v31 }
 0x33d   :  { %v296_v30 = vpop.permute.xlu0 %295 }
 0x33e   :  { %v302_v39 = vmul.f32 %v444_v38, %v296_v30 }
 0x33f   :  { %v252_v25 = vpop.permute.xlu1 %251 }
 0x340   :  { %v255_v48 = vmul.f32 %v441_v43, %v252_v25 }
 0x342   :  { %v311_v37 = vpop.permute.xlu0 %310 }
 0x343   :  { %vm313_vm14 = vcmp.eq.s32.totalorder %v311_v37, %v610_v14 }
 0x344   :  { %v276_v26 = vpop.permute.xlu1 %275  ;;  %v447_v51 = vsel %vm313_vm14, 1.0, %v551_v31 }
 0x345   :  { %v279_v42 = vmul.f32 %v443_v40, %v276_v26 }
 0x347   :  { %v281_v52 = vadd.f32 %v279_v42, %v255_v48 }
 0x349   :  { %v300_v27 = vpop.permute.xlu1 %299 }
 0x34a   :  { %v303_v49 = vmul.f32 %v445_v44, %v300_v27 }
 0x34c   :  { %v305_v55 = vadd.f32 %v303_v49, %v281_v52 }
 0x34e   :  { %v247_v29 = vpop.permute.xlu1 %246 }
 0x34f   :  { %v254_v35 = vmul.f32 %v440_v33, %v247_v29 }
 0x353   :  { %v272_v34 = vpop.permute.xlu1 %271 }
 0x354   :  { %v278_v36 = vmul.f32 %v442_v32, %v272_v34 }
 0x356   :  { %v280_v41 = vadd.f32 %v278_v36, %v254_v35 }
 0x358   :  { %v320_v46 = vpop.permute.xlu1 %319  ;;  %v304_v47 = vadd.f32 %v302_v39, %v280_v41 }
 0x359   :  { %v326_v50 = vmul.f32 %v446_v45, %v320_v46 }
 0x35b   :  { %v328_v53 = vadd.f32 %v326_v50, %v304_v47 }
 0x35c   :  { %v324_v54 = vpop.permute.xlu1 %323 }
 0x35d   :  { %v327_v56 = vmul.f32 %v447_v51, %v324_v54  ;;  %470 = vmatprep.mubr.msk.f32.mxu1 %vm330_vm15, %v328_v53 }
 0x35f   :  { %v329_v57 = vadd.f32 %v327_v56, %v305_v55 }
 0x361   :  { %471 = vmatmul.mubr.msk.f32.vlgmr.msra.gmra.mrb[0].mxu1 %vm330_vm15, %v329_v57 }
 0x434   :  { %v472_v14 = vpop.f32.mrb[0].mxu1 }
 0x435   :  { %v417_v58 = vsel %vm133_vm3, %v472_v14, 0.0  ;;  %v407_v59 = vpop.f32.mrb[1].mxu1 }
 0x436   :  { %419 = vst [vmem:[#allocation2 + $0x8] sm:$0xff] %v417_v58  ;;  %v416_v60 = vsel %vm133_vm3, %v407_v59, 0.0 }
 0x437   :  { %418 = vst [vmem:[#allocation2] sm:$0xff] %v416_v60 }
 0x438   :  { %533 = shalt.err (!%p530_p4)
}
 0x439   :  { %s534_s13 = scalar_lea.hbm %s688_s5, 256 }
 0x43a   :  { %p535_p5 = scmp.ne.s32.totalorder %s688_s5, %s534_s13  ;;  %p538_p6 = scmp.lt.u32.totalorder %s534_s13, %s688_s5 }
 0x43c   :  { %p540_p7 = pnand %p538_p6, %p535_p5 }
 0x43e   :  { %543 = shalt.err (!%p540_p7)
}
 0x43f   :  { %s553_s18 = smov 128   ;;  %s554_s19 = smov 8  }
 0x440   :  { %431 = dma.vmem_to_hbm [thread:$0]  %s426_s9, 256, %s688_s5, [#allocation3], %s553_s18, %s553_s18, %s554_s19  }
 0x441   :  { %544 = dma.done.wait [#allocation3], 256  }
 0x442   :  { %545 = vsyncadd [#allocation3], 4294967040 }
 0x443   :  { %435 = vsyncpa [#allocation3], 1 }

</bundles_post_ra>
